<compile_context>
chip_gen: v7x
topology: tpu7x:2x2x1
jax: 0.10.0
libtpu: 0.0.40
codegen_flags: <defaults>
</compile_context>

<pallas_src>
import jax
import jax.numpy as jnp
from jax.experimental import pallas as pl
from jax.experimental.pallas import tpu as pltpu


def _sinpos_kernel(t_ref, freq_ref, phase_ref, o_ref):
    # t_ref:     (Bb, 1)   timesteps for this batch tile
    # freq_ref:  (1, D)    duplicated inverse frequencies [inv_freq, inv_freq]
    # phase_ref: (1, D)    [0 ... 0, pi/2 ... pi/2]  (sin half | cos half)
    # o_ref:     (Bb, D)   [sin(t*inv_freq) | cos(t*inv_freq)]
    angle = t_ref[...] * freq_ref[...] + phase_ref[...]     # (Bb, D) VPU broadcast
    o_ref[...] = jnp.sin(angle).astype(o_ref.dtype)          # single EUP pass, one
                                                              # unmasked lane-dense store


def sinusoidal_positional_encoding(t, dim, *, out_dtype=jnp.float32,
                                   tile_bytes=4 << 20):
    """t: (B,) float -> (B, dim) positional encoding (matches the PyTorch module)."""
    assert dim % 2 == 0, "dim must be even (module uses dim // 2 frequencies)"
    B = t.shape[0]
    half = dim // 2

    # Constants (input-independent; constant-folded under jit).
    inv_freq = 1.0 / (10000.0 ** (jnp.arange(0, dim, 2, dtype=jnp.float32) / dim))
    freq_full = jnp.concatenate([inv_freq, inv_freq]).reshape(1, dim)        # (1, dim)
    phase = jnp.concatenate(
        [jnp.zeros((half,), jnp.float32),
         jnp.full((half,), jnp.pi / 2, jnp.float32)]).reshape(1, dim)        # (1, dim)

    t2 = t.astype(jnp.float32).reshape(B, 1)

    # Batch tile sized by output bytes (~tile_bytes per step), sublane-aligned.
    itemsize = jnp.dtype(out_dtype).itemsize
    rows_per_tile = max(8, ((tile_bytes // (dim * itemsize)) // 8) * 8)

    if B <= rows_per_tile:
        # Single grid step; block shape == full array dim, no alignment needed.
        Bb, B_pad = B, B
    else:
        Bb = int(rows_per_tile)
        B_pad = ((B + Bb - 1) // Bb) * Bb
        if B_pad != B:
            # Pad so the last tile is never partial (no masked sublane stores).
            t2 = jnp.pad(t2, ((0, B_pad - B), (0, 0)))

    grid = (B_pad // Bb,)

    out = pl.pallas_call(
        _sinpos_kernel,
        out_shape=jax.ShapeDtypeStruct((B_pad, dim), out_dtype),
        grid=grid,
        in_specs=[
            pl.BlockSpec((Bb, 1), lambda i: (i, 0)),       # t tile
            pl.BlockSpec((1, dim), lambda i: (0, 0)),      # duplicated inv_freq row
            pl.BlockSpec((1, dim), lambda i: (0, 0)),      # phase row (0 | pi/2)
        ],
        out_specs=pl.BlockSpec((Bb, dim), lambda i: (i, 0)),
        compiler_params=pltpu.CompilerParams(
            dimension_semantics=("parallel",),              # shards across v7x's 2 TCs
            vmem_limit_bytes=64 << 20,                      # explicit; tiles stay small
        ),
    )(t2, freq_full, phase)

    return out[:B] if B_pad != B else out


def ref_forward(t, dim):
    """Pure-JAX mirror of the PyTorch forward, for validation."""
    t_ = t.astype(jnp.float32)[:, None]
    inv_freq = 1.0 / (10000.0 ** (jnp.arange(0, dim, 2, dtype=jnp.float32) / dim))
    sin_enc = jnp.sin(t_ * inv_freq)
    cos_enc = jnp.cos(t_ * inv_freq)
    return jnp.concatenate([sin_enc, cos_enc], axis=-1)


if __name__ == "__main__":
    B, DIM = 8, 128   # typical diffusion time-embedding width; one (8,128) vreg of output

    key = jax.random.PRNGKey(0)
    t = jax.random.uniform(key, (B,), jnp.float32, minval=0.0, maxval=1000.0)

    out = jax.block_until_ready(sinusoidal_positional_encoding(t, DIM))

    assert out.shape == (B, DIM), out.shape
    assert bool(jnp.all(jnp.isfinite(out)))

    ref = jax.block_until_ready(ref_forward(t, DIM))
    assert bool(jnp.allclose(out, ref, rtol=1e-3, atol=1e-3)), (
        float(jnp.max(jnp.abs(out - ref))))

    print("KERNEL_OK")
</pallas_src>

<mosaic_0001>
module attributes {stable_mosaic.version = 11 : i64} {
  func.func @_sinpos_kernel(%arg0: i32, %arg1: memref<8x1xf32, #tpu.memory_space<vmem>>, %arg2: memref<1x128xf32, #tpu.memory_space<vmem>>, %arg3: memref<1x128xf32, #tpu.memory_space<vmem>>, %arg4: memref<8x128xf32, #tpu.memory_space<vmem>>) attributes {dimension_semantics = [#tpu.dimension_semantics<parallel>], iteration_bounds = array<i64: 1>, scalar_prefetch = 0 : i64, scratch_operands = 0 : i64, tpu.core_type = #tpu.core_type<tc>, window_params = [{transform_indices = @transform_0, window_bounds = array<i64: 8, 1>}, {pipeline_mode = #tpu.pipeline_mode<synchronous>, transform_indices = @transform_1, window_bounds = array<i64: 1, 128>}, {pipeline_mode = #tpu.pipeline_mode<synchronous>, transform_indices = @transform_2, window_bounds = array<i64: 1, 128>}, {transform_indices = @transform_3, window_bounds = array<i64: 8, 128>}]} {
    %c0 = arith.constant 0 : index
    %c0_0 = arith.constant 0 : index
    %0 = vector.load %arg1[%c0, %c0_0] : memref<8x1xf32, #tpu.memory_space<vmem>>, vector<8x1xf32>
    %c0_1 = arith.constant 0 : index
    %c0_2 = arith.constant 0 : index
    %1 = vector.load %arg2[%c0_1, %c0_2] : memref<1x128xf32, #tpu.memory_space<vmem>>, vector<1x128xf32>
    %2 = vector.broadcast %0 : vector<8x1xf32> to vector<8x128xf32>
    %3 = vector.broadcast %1 : vector<1x128xf32> to vector<8x128xf32>
    %4 = arith.mulf %2, %3 : vector<8x128xf32>
    %c0_3 = arith.constant 0 : index
    %c0_4 = arith.constant 0 : index
    %5 = vector.load %arg3[%c0_3, %c0_4] : memref<1x128xf32, #tpu.memory_space<vmem>>, vector<1x128xf32>
    %6 = vector.broadcast %5 : vector<1x128xf32> to vector<8x128xf32>
    %7 = arith.addf %4, %6 : vector<8x128xf32>
    %8 = math.sin %7 : vector<8x128xf32>
    %c0_5 = arith.constant 0 : index
    %c0_6 = arith.constant 0 : index
    %9 = vector.load %arg4[%c0_5, %c0_6] : memref<8x128xf32, #tpu.memory_space<vmem>>, vector<8x128xf32>
    tpu.vector_store %arg4[%c0_5, %c0_6], %8 {strides = array<i32>} : memref<8x128xf32, #tpu.memory_space<vmem>>, vector<8x128xf32>,
    return
  }
  func.func @transform_0(%arg0: i32) -> (i32, i32) {
    %c0_i32 = arith.constant 0 : i32
    %c0_i32_0 = arith.constant 0 : i32
    return %arg0, %c0_i32 : i32, i32
  }
  func.func @transform_1(%arg0: i32) -> (i32, i32) {
    %c0_i32 = arith.constant 0 : i32
    %c0_i32_0 = arith.constant 0 : i32
    %c0_i32_1 = arith.constant 0 : i32
    return %c0_i32, %c0_i32_0 : i32, i32
  }
  func.func @transform_2(%arg0: i32) -> (i32, i32) {
    %c0_i32 = arith.constant 0 : i32
    %c0_i32_0 = arith.constant 0 : i32
    %c0_i32_1 = arith.constant 0 : i32
    return %c0_i32, %c0_i32_0 : i32, i32
  }
  func.func @transform_3(%arg0: i32) -> (i32, i32) {
    %c0_i32 = arith.constant 0 : i32
    %c0_i32_0 = arith.constant 0 : i32
    return %arg0, %c0_i32 : i32, i32
  }
}

</mosaic_0001>

<bundles_post_ra>
// kernel: tpu_custom_call.1
= control target key start
LH: loop header
LB: loop body
LE: loop exit
PB: predicated region body
PF: predicated region fallthrough
CT: control target
= control target key end

     0   :  { %8 = vsyncpa [#allocation3], 0  ;;  %s413_s0 = inlined_call_operand.hbm [shape: f32[8,1], index: 0, kind: input, shape index: {}]   ;;  %s414_s1 = inlined_call_operand.hbm [shape: f32[1,128], index: 1, kind: input, shape index: {}]   ;;  %s415_s2 = inlined_call_operand.hbm [shape: f32[1,128], index: 2, kind: input, shape index: {}]   ;;  %s416_s3 = inlined_call_operand.hbm [shape: f32[8,128], index: 3, kind: output, shape index: {}]  }
   0x1   :  { %9 = vsyncpa [#allocation6], 0 }
   0x2   :  { %10 = vsyncpa [#allocation4], 0  ;;  %s313_s12 = smov [#allocation5]   ;;  %s314_s14 = smov [#allocation2]  }
   0x3   :  { %s27_s13 = sshll.u32 %s313_s12, 4  ;;  %s17_s15 = sshll.u32 %s314_s14, 4  ;;  %s28_s13 = int_to_ptr.vmem [resolvable:$true] %s27_s13  ;;  %s18_s15 = int_to_ptr.vmem [resolvable:$true] %s17_s15 }
   0x4   :  { %s219_s18 = scalar_lea.hbm %s414_s1, 16 }
   0x5   :  { %p220_p0 = scmp.ne.s32.totalorder %s414_s1, %s219_s18  ;;  %p223_p1 = scmp.lt.u32.totalorder %s219_s18, %s414_s1 }
   0x7   :  { %p225_p2 = pnand %p223_p1, %p220_p0 }
   0x9   :  { %228 = shalt.err (!%p225_p2)
}
   0xa   :  { %s229_s23 = scalar_lea.vmem %s28_s13, 16  ;;  %s233_s24 = scalar_lea.vmem %s28_s13, 32 }
   0xb   :  { %p230_p3 = scmp.ne.s32.totalorder %s28_s13, %s229_s23  ;;  %p234_p4 = scmp.lt.s32.totalorder %s28_s13, %s28_s13 }
   0xc   :  { %p235_p5 = scmp.lt.s32.totalorder %s233_s24, %s229_s23 }
   0xe   :  { %p236_p6 = por %p235_p5, %p234_p4 }
  0x10   :  { %p237_p7 = pnand %p236_p6, %p230_p3 }
  0x12   :  { %240 = shalt.err (!%p237_p7)
}
  0x13   :  { %30 = dma.hbm_to_vmem [thread:$0]  %s414_s1, 16, %s28_s13, [#allocation6]  }
  0x14   :  { %s241_s29 = scalar_lea.hbm %s413_s0, 128 }
  0x15   :  { %p242_p8 = scmp.ne.s32.totalorder %s413_s0, %s241_s29  ;;  %p245_p9 = scmp.lt.u32.totalorder %s241_s29, %s413_s0 }
  0x17   :  { %p247_p10 = pnand %p245_p9, %p242_p8 }
  0x19   :  { %250 = shalt.err (!%p247_p10)
}
  0x1a   :  { %s251_s7 = scalar_lea.vmem %s18_s15, 128  ;;  %p256_p12 = scmp.lt.s32.totalorder %s18_s15, %s18_s15 }
  0x1b   :  { %p252_p11 = scmp.ne.s32.totalorder %s18_s15, %s251_s7  ;;  %p257_p13 = scmp.lt.s32.totalorder %s251_s7, %s251_s7 }
  0x1d   :  { %p258_p0 = por %p257_p13, %p256_p12 }
  0x1f   :  { %p259_p1 = pnand %p258_p0, %p252_p11 }
  0x21   :  { %262 = shalt.err (!%p259_p1)
}
  0x22   :  { %20 = dma.hbm_to_vmem [thread:$0]  %s413_s0, 128, %s18_s15, [#allocation3]  }
  0x23   :  { %s315_s9 = smov [#allocation7]   ;;  %s263_s13 = scalar_lea.hbm %s415_s2, 16 }
  0x24   :  { %s37_s10 = sshll.u32 %s315_s9, 4  ;;  %p264_p2 = scmp.ne.s32.totalorder %s415_s2, %s263_s13  ;;  %s38_s10 = int_to_ptr.vmem [resolvable:$true] %s37_s10 }
  0x25   :  { %p267_p3 = scmp.lt.u32.totalorder %s263_s13, %s415_s2 }
  0x27   :  { %p269_p4 = pnand %p267_p3, %p264_p2 }
  0x29   :  { %272 = shalt.err (!%p269_p4)
}
  0x2a   :  { %s273_s19 = scalar_lea.vmem %s38_s10, 16  ;;  %s277_s0 = scalar_lea.vmem %s38_s10, 32 }
  0x2b   :  { %p274_p5 = scmp.ne.s32.totalorder %s38_s10, %s273_s19  ;;  %p278_p6 = scmp.lt.s32.totalorder %s38_s10, %s38_s10 }
  0x2c   :  { %p279_p7 = scmp.lt.s32.totalorder %s277_s0, %s273_s19 }
  0x2e   :  { %p280_p8 = por %p279_p7, %p278_p6 }
  0x30   :  { %p281_p9 = pnand %p280_p8, %p274_p5 }
  0x32   :  { %284 = shalt.err (!%p281_p9)
}
  0x33   :  { %40 = dma.hbm_to_vmem [thread:$0]  %s415_s2, 16, %s38_s10, [#allocation6]  }
  0x34   :  { %307 = dma.done.wait [#allocation3], 128  }
  0x35   :  { %308 = vsyncadd [#allocation3], 4294967168 }
  0x36   :  { %309 = dma.done.wait [#allocation6], 32  }
  0x37   :  { %310 = vsyncadd [#allocation6], 4294967264  ;;  %v316_v0 = vmov 0   ;;  %v50_v1 = vld [vmem:[#allocation2] sm:$0xff]  ;;  %v193_v2 = vld [vmem:[#allocation5] ss:$0 sm:$0xff] }
  0x38   :  { %214 = vset.pattern.permute.xlu0 %v316_v0  ;;  %v194_v3 = vld [vmem:[#allocation7] ss:$0 sm:$0xff]  ;;  %v317_v18 = vmov 2102212464   ;;  %v318_v20 = vmov 920167782  }
  0x39   :  { %54 = vperm.xlu0 %214, %v50_v1   ;;  %v319_v24 = vmov 1326507024   ;;  %v320_v26 = vmov 683565275   ;;  %v321_v28 = vmov 2475754826  }
  0x3a   :  { %v322_v31 = vmov 2131351028   ;;  %s323_s2 = smov [#allocation8]  }
  0x3b   :  { %s183_s21 = sshll.u32 %s323_s2, 4  ;;  %s184_s21 = int_to_ptr.vmem [resolvable:$true] %s183_s21 }
  0x3c   :  { %s285_s22 = scalar_lea.vmem %s184_s21, 128  ;;  %p290_p11 = scmp.lt.s32.totalorder %s184_s21, %s184_s21 }
  0x3d   :  { %p286_p10 = scmp.ne.s32.totalorder %s184_s21, %s285_s22  ;;  %p291_p12 = scmp.lt.s32.totalorder %s285_s22, %s285_s22 }
  0x3f   :  { %p292_p13 = por %p291_p12, %p290_p11 }
  0x41   :  { %p293_p0 = pnand %p292_p13, %p286_p10 }
  0xb8   :  { %v55_v4 = vpop.permute.xlu0 %54 }
  0xb9   :  { %v63_v5 = vmul.f32 %v193_v2, %v55_v4 }
  0xbb   :  { %v380_v6 = vadd.f32 %v194_v3, %v63_v5 }
  0xbd   :  { %v75_v7 = vand.u32 2139095040, %v380_v6  ;;  %v72_v8 = vand.u32 2147483647, %v380_v6  ;;  %vm74_vm7 = vcmp.lt.s32.totalorder %v380_v6, 0  ;;  %vm164_vm12 = vweird.f32 %v380_v6 }
  0xbf   :  { %v76_v9 = vshrl.u32 %v75_v7, 23  ;;  %v79_v11 = vand.u32 8388607, %v72_v8  ;;  %vm73_vm8 = vcmp.le.f32.partialorder %v72_v8, 0.7853982 }
  0xc1   :  { %v195_v10 = vadd.s32 4294967169, %v76_v9  ;;  %v80_v14 = vor.u32 8388608, %v79_v11 }
  0xc3   :  { %v82_v12 = vadd.s32 1, %v195_v10  ;;  %v120_v22 = vshll.u32 %v80_v14, 8 }
  0xc5   :  { %vm83_vm0 = vcmp.gt.s32.totalorder %v82_v12, 0 }
  0xc6   :  { %v84_v13 = vsel %vm83_vm0, %v82_v12, 0 }
  0xc7   :  { %v86_v15 = vand.u32 31, %v84_v13  ;;  %v85_v16 = vshrl.u32 %v84_v13, 5 }
  0xc9   :  { %v87_v17 = vsub.s32 32, %v86_v15  ;;  %v98_v19 = vshll.u32 %v317_v18, %v86_v15  ;;  %v101_v21 = vshll.u32 %v318_v20, %v86_v15  ;;  %v89_v27 = vshll.u32 %v320_v26, %v86_v15 }
  0xca   :  { %v92_v30 = vshll.u32 %v321_v28, %v86_v15  ;;  %v95_v33 = vshll.u32 %v322_v31, %v86_v15  ;;  %vm107_vm1 = vcmp.lt.s32.totalorder %v85_v16, 4  ;;  %vm104_vm2 = vcmp.lt.s32.totalorder %v85_v16, 1 }
  0xcb   :  { %v99_v23 = vshrl.u32 %v318_v20, %v87_v17  ;;  %v102_v25 = vshrl.u32 %v319_v24, %v87_v17  ;;  %v90_v29 = vshrl.u32 %v321_v28, %v87_v17  ;;  %v93_v32 = vshrl.u32 %v322_v31, %v87_v17 }
  0xcc   :  { %v96_v34 = vshrl.u32 %v317_v18, %v87_v17  ;;  %v88_v38 = vshrl.u32 %v320_v26, %v87_v17  ;;  %vm105_vm3 = vcmp.lt.s32.totalorder %v85_v16, 2  ;;  %vm106_vm4 = vcmp.lt.s32.totalorder %v85_v16, 3 }
  0xcd   :  { %v100_v35 = vor.u32 %v99_v23, %v98_v19  ;;  %v103_v36 = vor.u32 %v102_v25, %v101_v21  ;;  %v91_v37 = vor.u32 %v90_v29, %v89_v27  ;;  %v94_v39 = vor.u32 %v93_v32, %v92_v30 }
  0xce   :  { %v97_v40 = vor.u32 %v96_v34, %v95_v33 }
  0xcf   :  { %v113_v41 = vsel %vm107_vm1, %v100_v35, 920167782  ;;  %v117_v42 = vsel %vm107_vm1, %v103_v36, 1326507024  ;;  %v112_v44 = vsel %vm104_vm2, %v91_v37, %v94_v39  ;;  %v108_v47 = vsel %vm104_vm2, %v88_v38, %v91_v37 }
  0xd0   :  { %v109_v43 = vsel %vm107_vm1, %v97_v40, 2102212464  ;;  %v114_v45 = vsel %vm106_vm4, %v97_v40, %v113_v41  ;;  %v116_v46 = vsel %vm104_vm2, %v94_v39, %v97_v40  ;;  %v118_v50 = vsel %vm106_vm4, %v100_v35, %v117_v42 }
  0xd1   :  { %v110_v48 = vsel %vm106_vm4, %v94_v39, %v109_v43  ;;  %v115_v49 = vsel %vm105_vm3, %v112_v44, %v114_v45  ;;  %v119_v51 = vsel %vm105_vm3, %v116_v46, %v118_v50 }
  0xd2   :  { %v386_v52 = vmul.u32.u64.low %v120_v22, %v115_v49  ;;  %v387_v53 = vmul.u32.u64.high %v120_v22, %v115_v49, %v386_v52  ;;  %v389_v54 = vmul.u32.u64.low %v120_v22, %v119_v51  ;;  %v390_v55 = vmul.u32.u64.high %v120_v22, %v119_v51, %v389_v54 }
  0xd3   :  { %v111_v56 = vsel %vm105_vm3, %v108_v47, %v110_v48 }
  0xd4   :  { %v130_v57 = vadd.s32 1, %v387_v53  ;;  %v127_v58 = vmul.u32 %v120_v22, %v111_v56  ;;  %vm129_vm5 = vc.u32 %v390_v55, %v386_v52  ;;  %v128_v7 = vadd.s32 %v386_v52, %v390_v55 }
  0xd6   :  { %v131_v59 = vsel %vm129_vm5, %v130_v57, %v387_v53 }
  0xd7   :  { %v132_v60 = vadd.s32 %v131_v59, %v127_v58 }
  0xd9   :  { %v133_v61 = vadd.s32 536870912, %v132_v60 }
  0xdb   :  { %v134_v62 = vshrl.u32 %v133_v61, 30 }
  0xdd   :  { %v135_v63 = vshll.u32 %v134_v62, 30  ;;  %v158_v20 = vsub.s32 4, %v134_v62 }
  0xdf   :  { %v136_v0 = vsub.s32 %v132_v60, %v135_v63  ;;  %v159_v23 = vsel %vm74_vm7, %v158_v20, %v134_v62 }
  0xe0   :  { %v161_v25 = vsel %vm73_vm8, 0, %v159_v23 }
  0xe1   :  { %v138_v1 = vsub.s32 0, %v136_v0  ;;  %v165_v26 = vadd.s32 3, %v161_v25 }
  0xe3   :  { %v196_v2 = vmin.u32 %v138_v1, %v136_v0  ;;  %v166_v27 = vand.u32 3, %v165_v26 }
  0xe5   :  { %v140_v3 = vclz %v196_v2  ;;  %vm171_vm9 = vcmp.eq.s32.totalorder %v166_v27, 2  ;;  %vm168_vm10 = vcmp.eq.s32.totalorder %v166_v27, 0  ;;  %vm167_vm11 = vcmp.lt.s32.totalorder %v166_v27, 2 }
  0xe7   :  { %v197_v4 = vadd.s32 4294967294, %v140_v3 }
  0xe9   :  { %vm198_vm6 = vcmp.lt.s32.totalorder %v197_v4, 0 }
  0xea   :  { %v143_v5 = vsel %vm198_vm6, 0, %v197_v4 }
  0xeb   :  { %v144_v9 = vsub.s32 32, %v143_v5  ;;  %v148_v10 = vsub.s32 4294967266, %v143_v5  ;;  %v145_v11 = vshll.u32 %v136_v0, %v143_v5 }
  0xed   :  { %v146_v12 = vshrl.u32 %v128_v7, %v144_v9  ;;  %v149_v13 = vadd.s32 127, %v148_v10 }
  0xef   :  { %v147_v14 = vor.u32 %v146_v12, %v145_v11  ;;  %v150_v15 = vshll.u32 %v149_v13, 23 }
  0xf1   :  { %v151_v16 = vor.u32 4788187, %v150_v15  ;;  %v154_v18 = vcvt.s32.f32 %v147_v14 }
  0xf3   :  { %v152_v17 = vand.u32 2147483647, %v151_v16 }
  0xf5   :  { %v155_v19 = vmul.f32 %v154_v18, %v152_v17 }
  0xf7   :  { %v156_v21 = vxor.u32 2147483648, %v155_v19 }
  0xf9   :  { %v157_v22 = vsel %vm74_vm7, %v156_v21, %v155_v19 }
  0xfa   :  { %v160_v24 = vsel %vm73_vm8, %v380_v6, %v157_v22 }
  0xfb   :  { %215 = vcosq.f32 %v160_v24 }
  0xfc   :  { %217 = vsinq.f32 %v160_v24 }
 0x105   :  { %v216_v28 = vpop.eup %215 }
 0x106   :  { %v218_v29 = vpop.eup %217  ;;  %v172_v30 = vxor.u32 2147483648, %v216_v28 }
 0x107   :  { %v169_v31 = vxor.u32 2147483648, %v218_v29 }
 0x108   :  { %v173_v32 = vsel %vm171_vm9, %v172_v30, %v218_v29 }
 0x109   :  { %v170_v8 = vsel %vm168_vm10, %v216_v28, %v169_v31 }
 0x10a   :  { %v174_v33 = vsel %vm167_vm11, %v170_v8, %v173_v32 }
 0x10b   :  { %v175_v34 = vsel %vm164_vm12, nan, %v174_v33 }
 0x10c   :  { %176 = vst [vmem:[#allocation8] sm:$0xff] %v175_v34 }
 0x10d   :  { %296 = shalt.err (!%p293_p0)
}
 0x10e   :  { %s297_s25 = scalar_lea.hbm %s416_s3, 128 }
 0x10f   :  { %p298_p1 = scmp.ne.s32.totalorder %s416_s3, %s297_s25  ;;  %p301_p2 = scmp.lt.u32.totalorder %s297_s25, %s416_s3 }
 0x111   :  { %p303_p3 = pnand %p301_p2, %p298_p1 }
 0x113   :  { %306 = shalt.err (!%p303_p3)
}
 0x114   :  { %186 = dma.vmem_to_hbm [thread:$0]  %s184_s21, 128, %s416_s3, [#allocation4]  }
 0x115   :  { %311 = dma.done.wait [#allocation4], 128  }
 0x116   :  { %312 = vsyncadd [#allocation4], 4294967168 }
 0x117   :  { %190 = vsyncpa [#allocation3], 1 }
 0x118   :  { %191 = vsyncpa [#allocation6], 1 }
 0x119   :  { %192 = vsyncpa [#allocation4], 1 }

</bundles_post_ra>
